<compile_context>
chip_gen: v7x
topology: tpu7x:2x2x1
jax: 0.10.0
libtpu: 0.0.40
codegen_flags: <defaults>
</compile_context>

<pallas_src>
import functools

import jax
import jax.numpy as jnp
from jax import lax
from jax.experimental import pallas as pl
from jax.experimental.pallas import tpu as pltpu

LRELU_SLOPE = 0.1
COMPUTE_DTYPE = jnp.bfloat16     # MXU matmul dtype (f32 accumulation)
ACT_DTYPE = jnp.bfloat16         # inter-layer activation storage dtype
MAX_TILE_T = 512                 # lane-dense time tile upper bound
LANE = 128


def _round_up(n, m):
    return ((n + m - 1) // m) * m


@functools.lru_cache(maxsize=1)
def _vmem_limit_bytes():
    # ~3/4 of per-core physical VMEM (v5e/v6e: 128 MiB -> 96 MiB, v7x: 64 MiB
    # -> 48 MiB), with a conservative fallback if the query is unavailable.
    try:
        cap = pltpu.get_tpu_info().vmem_capacity_bytes
        return int(min(100 * 1024 * 1024, (cap * 3) // 4))
    except Exception:
        return 48 * 1024 * 1024


def _choose_tile(t128, max_ch):
    cap = MAX_TILE_T if max_ch <= 256 else 256
    for t in (512, 256, 128):
        if t <= cap and t128 % t == 0:
            return t
    return 128


# ----------------------------------------------------------------------------
# Chain descriptors: a "chain" is a sequence of stride-1 convs applied to one
# output tile, fused in a single kernel.  Output position j of a step reads
# input positions j + start + t*d (t in [0, K)), out-of-range reads are zero.
# ----------------------------------------------------------------------------
def _step(K, d=1, start=None, act_in=False, slope=LRELU_SLOPE, in_scale=1.0,
          carry_in=False, add_carry=False):
    if start is None:
        start = -((d * (K - 1)) // 2)          # "same" padding
    return dict(K=K, d=d, start=start, act_in=act_in, slope=slope,
                in_scale=in_scale, carry_in=carry_in, add_carry=add_carry)


def _chain_window(steps, tile_t):
    """Relative input window [lo, hi) needed to produce output lanes [0, tile)."""
    lo, hi = 0, tile_t
    for st in reversed(steps):
        lo += st["start"]
        hi += st["start"] + st["d"] * (st["K"] - 1)
    return lo, hi


# ----------------------------------------------------------------------------
# Fused conv-chain kernel body.
# ----------------------------------------------------------------------------
def _make_chain_kernel(steps, *, tile_t, lo, hi, t_valid, has_prev, has_next,
                       has_acc, out_dtype, final_tanh):
    n_steps = len(steps)

    def kernel(*refs):
        i = 0
        prev = nxt = None
        if has_prev:
            prev = refs[i][0]; i += 1
        cur = refs[i][0]; i += 1
        if has_next:
            nxt = refs[i][0]; i += 1
        wb = []
        for _ in range(n_steps):
            wb.append((refs[i], refs[i + 1])); i += 2
        acc_ref = None
        if has_acc:
            acc_ref = refs[i]; i += 1
        o_ref = refs[i]

        ti = pl.program_id(1)
        base = ti * tile_t                     # global position of output lane 0

        def mask(v, rel_lo):
            # zero lanes whose global position is outside [0, t_valid); this
            # both emulates the zero-padding of every (intermediate) conv and
            # fixes up the clamped prev/next halo fetches at the boundaries.
            n = v.shape[-1]
            pos = base + rel_lo + lax.broadcasted_iota(jnp.int32, (1, n), 1)
            keep = jnp.logical_and(pos >= 0, pos < t_valid)
            return v * keep.astype(v.dtype)

        # Assemble the input window covering relative positions [lo, hi).
        parts = []
        if lo < 0:
            parts.append(prev[:, LANE + lo:])
        parts.append(cur[:, max(lo, 0):min(hi, tile_t)])
        if hi > tile_t:
            parts.append(nxt[:, :hi - tile_t])
        x = parts[0] if len(parts) == 1 else jnp.concatenate(parts, axis=-1)
        x = mask(x.astype(jnp.float32), lo)

        w_lo, w_hi = lo, hi
        carry, carry_lo = None, 0
        for si, st in enumerate(steps):
            w_ref, b_ref = wb[si]
            if st["carry_in"]:
                carry, carry_lo = x, w_lo
            v = x
            if st["in_scale"] != 1.0:          # folded 1/num_kernels mean
                v = v * jnp.float32(st["in_scale"])
            if st["act_in"]:                   # leaky_relu in f32 on the VPU
                v = jnp.where(v >= 0, v, jnp.float32(st["slope"]) * v)
            K, d = st["K"], st["d"]
            out_lo = w_lo - st["start"]
            out_len = (w_hi - w_lo) - d * (K - 1)
            vb = v.astype(w_ref.dtype)         # bf16 before tap staging
            if K == 1:
                y = jnp.dot(w_ref[...], vb[:, :out_len],
                            preferred_element_type=jnp.float32)
            else:
                cin_s = w_ref.shape[1] // K
                if cin_s >= 256:
                    # contraction per tap already fills the MXU: accumulate
                    # K matmuls, skip the tap-stacking copy entirely.
                    w_all = w_ref[...]
                    y = jnp.dot(w_all[:, :cin_s], vb[:, :out_len],
                                preferred_element_type=jnp.float32)
                    for t in range(1, K):
                        y = y + jnp.dot(w_all[:, t * cin_s:(t + 1) * cin_s],
                                        vb[:, t * d: t * d + out_len],
                                        preferred_element_type=jnp.float32)
                else:
                    xk = jnp.concatenate(
                        [vb[:, t * d: t * d + out_len] for t in range(K)],
                        axis=0)
                    y = jnp.dot(w_ref[...], xk,
                                preferred_element_type=jnp.float32)
            y = y + b_ref[...]                 # (C_out, 1) broadcast
            if st["add_carry"]:                # fused residual (x = conv + x)
                off = out_lo - carry_lo
                y = y + carry[:, off: off + out_len]
            y = mask(y, out_lo)
            x, w_lo, w_hi = y, out_lo, out_lo + out_len

        # here w_lo == 0 and w_hi == tile_t by construction
        if has_acc:                            # fused cross-resblock sum
            x = x + acc_ref[0].astype(jnp.float32)
        if final_tanh:
            x = jnp.tanh(x)                    # EUP
        o_ref[0] = x.astype(out_dtype)

    return kernel


# ----------------------------------------------------------------------------
# Pallas wrapper: tiled fused conv chain.
#   x: (B, C_in, T_phys) with T_phys a multiple of 128, lanes >= t_valid zero.
#   Output: (B, c_out, round_up(t_valid, 128)), lanes >= t_valid zeroed.
# ----------------------------------------------------------------------------
def pallas_conv_chain(x, steps, weights, *, t_valid, c_out, acc=None,
                      out_dtype=ACT_DTYPE, final_tanh=False):
    assert len(weights) == len(steps)
    B, C_in, T_phys_in = x.shape
    t128 = _round_up(t_valid, LANE)
    assert T_phys_in >= t128 and T_phys_in % LANE == 0, (T_phys_in, t128)
    tile_t = _choose_tile(t128, max(C_in, c_out))
    n_t = t128 // tile_t
    lo, hi = _chain_window(steps, tile_t)
    assert -LANE <= lo and hi <= tile_t + LANE, (lo, hi, tile_t)
    has_prev, has_next = lo < 0, hi > tile_t
    r = tile_t // LANE
    nlb_in = T_phys_in // LANE

    in_specs, args = [], []
    if has_prev:
        in_specs.append(pl.BlockSpec(
            (1, C_in, LANE),
            lambda b, ti: (b, 0, jnp.maximum(ti * r - 1, 0))))
        args.append(x)
    in_specs.append(pl.BlockSpec((1, C_in, tile_t), lambda b, ti: (b, 0, ti)))
    args.append(x)
    if has_next:
        in_specs.append(pl.BlockSpec(
            (1, C_in, LANE),
            lambda b, ti: (b, 0, jnp.minimum((ti + 1) * r, nlb_in - 1))))
        args.append(x)
    for (w2, b2) in weights:                   # VMEM-resident across tiles
        in_specs.append(pl.BlockSpec(w2.shape, lambda b, ti: (0, 0)))
        args.append(w2)
        in_specs.append(pl.BlockSpec(b2.shape, lambda b, ti: (0, 0)))
        args.append(b2)
    if acc is not None:
        in_specs.append(pl.BlockSpec((1, c_out, tile_t),
                                     lambda b, ti: (b, 0, ti)))
        args.append(acc)
    out_specs = pl.BlockSpec((1, c_out, tile_t), lambda b, ti: (b, 0, ti))

    kern = _make_chain_kernel(steps, tile_t=tile_t, lo=lo, hi=hi,
                              t_valid=t_valid, has_prev=has_prev,
                              has_next=has_next, has_acc=acc is not None,
                              out_dtype=out_dtype, final_tanh=final_tanh)
    return pl.pallas_call(
        kern,
        out_shape=jax.ShapeDtypeStruct((B, c_out, t128), out_dtype),
        grid=(B, n_t),
        in_specs=in_specs,
        out_specs=out_specs,
        compiler_params=pltpu.CompilerParams(
            dimension_semantics=("parallel", "parallel"),
            vmem_limit_bytes=_vmem_limit_bytes()),
    )(*args)


# ----------------------------------------------------------------------------
# One-time parameter preprocessing (hoisted out of the forward pass).
# ----------------------------------------------------------------------------
def _pack_conv_weight(w, b, pad_cout_to=None):
    """w: (C_out, C_in, K) f32 -> tap-major (C_out, K*C_in) bf16 + (C_out,1) f32."""
    C_out, C_in, K = w.shape
    if pad_cout_to is not None and C_out < pad_cout_to:
        w = jnp.concatenate(
            [w, jnp.zeros((pad_cout_to - C_out, C_in, K), w.dtype)], axis=0)
        if b is not None:
            b = jnp.concatenate([b, jnp.zeros((pad_cout_to - C_out,), b.dtype)])
        C_out = pad_cout_to
    w2 = jnp.transpose(w, (0, 2, 1)).reshape(C_out, K * C_in).astype(COMPUTE_DTYPE)
    b2 = (jnp.zeros((C_out, 1), jnp.float32) if b is None
          else b.astype(jnp.float32).reshape(C_out, 1))
    return {"w": w2, "b": b2, "K": K, "C_in": C_in, "C_out": C_out}


def _build_polyphase(w_ct, b, u, p):
    """ConvTranspose1d(stride=u, K, padding=p) -> u stride-1 phase convs stacked
    along C_out (sub-pixel / polyphase form).  Exact rewrite, no zero-stuffing.
    Phase output position m reads x[m + off_min + q] (q in [0, Ku))."""
    C_in, C_out, K = w_ct.shape
    w_eq = jnp.transpose(w_ct, (1, 0, 2))[:, :, ::-1]        # (C_out, C_in, K)
    edge = K - 1 - p
    offs, taps = [], []
    for r in range(u):
        t0 = (edge - r) % u
        tr = list(range(t0, K, u))
        taps.append(tr)
        offs.append((r + t0 - edge) // u)                     # exact multiple
    assert all(len(t) > 0 for t in taps)
    off_min = min(offs)
    off_max = max(o + len(t) - 1 for o, t in zip(offs, taps))
    Ku = off_max - off_min + 1
    W = jnp.zeros((u * C_out, C_in, Ku), w_eq.dtype)
    for r in range(u):
        for s, t in enumerate(taps[r]):
            W = W.at[r * C_out:(r + 1) * C_out, :, offs[r] - off_min + s].set(
                w_eq[:, :, t])
    b_st = jnp.tile(b, (u,))
    return W, b_st, off_min


def prepare_pallas_params(params, cfg):
    pp = {"conv_pre": _pack_conv_weight(params["conv_pre"]["w"],
                                        params["conv_pre"]["b"])}
    if "cond" in params:
        pp["cond"] = _pack_conv_weight(params["cond"]["w"], params["cond"]["b"])
    pp["ups"] = []
    for i, (u, k) in enumerate(zip(cfg["upsample_rates"],
                                   cfg["upsample_kernel_sizes"])):
        p = (k - u) // 2
        W, b_st, off_min = _build_polyphase(
            params["ups"][i]["w"], params["ups"][i]["b"], u, p)
        entry = _pack_conv_weight(W, b_st)
        entry.update(u=u, start=off_min)
        pp["ups"].append(entry)
    pp["resblocks"] = []
    for rb in params["resblocks"]:
        pp["resblocks"].append({
            "c1": [_pack_conv_weight(w, b) for w, b in zip(rb["w1"], rb["b1"])],
            "c2": [_pack_conv_weight(w, b) for w, b in zip(rb["w2"], rb["b2"])],
        })
    # conv_post has C_out == 1: pad to 8 output rows (zero weights) to avoid a
    # degenerate sublane-1 masked-store layout; the real row is sliced out.
    pp["conv_post"] = _pack_conv_weight(params["conv_post"]["w"], None,
                                        pad_cout_to=8)
    return pp


# ----------------------------------------------------------------------------
# Generator forward using the fused Pallas conv-chain kernels.
# ----------------------------------------------------------------------------
def pallas_generator_forward(pp, cfg, x, g=None):
    nk = len(cfg["resblock_kernel_sizes"])
    rb_type = cfg.get("resblock", "1")
    B, _, T = x.shape
    t_valid = T
    t128 = _round_up(T, LANE)
    if t128 != T:
        x = jnp.pad(x, ((0, 0), (0, 0), (0, t128 - T)))   # one-time small pad

    cp = pp["conv_pre"]
    x = pallas_conv_chain(
        x, [_step(K=cp["K"])], [(cp["w"], cp["b"])],
        t_valid=t_valid, c_out=cp["C_out"])
    if g is not None:
        cd = pp["cond"]
        # TODO(synk): global conditioning with g time-length 1 (broadcast over
        # time) is not handled; this path assumes g matches x's length.
        gp = jnp.pad(g, ((0, 0), (0, 0), (0, t128 - g.shape[-1])))
        x = pallas_conv_chain(gp, [_step(K=cd["K"], start=0)],
                              [(cd["w"], cd["b"])], t_valid=t_valid,
                              c_out=cd["C_out"], acc=x)

    scale = 1.0     # running 1/num_kernels mean from the previous stage
    for i in range(len(cfg["upsample_rates"])):
        up = pp["ups"][i]
        u = up["u"]
        # polyphase transposed conv; previous-stage mean scale and leaky_relu
        # are fused into the kernel (leaky(0)=0 keeps the zero-lane invariant)
        y = pallas_conv_chain(
            x, [_step(K=up["K"], start=up["start"], act_in=True,
                      slope=LRELU_SLOPE, in_scale=scale)],
            [(up["w"], up["b"])], t_valid=t_valid, c_out=up["C_out"])
        Bv, uC, Tp = y.shape
        C = uC // u
        # sub-pixel interleave of the u phase outputs (single bf16 transpose).
        # TODO(synk): fuse the phase interleave into the kernel's output store.
        x = y.reshape(B, u, C, Tp).transpose(0, 2, 3, 1).reshape(B, C, Tp * u)
        t_valid = t_valid * u

        acc = None
        for j, (k_rb, dils) in enumerate(zip(cfg["resblock_kernel_sizes"],
                                             cfg["resblock_dilation_sizes"])):
            rb = pp["resblocks"][i * nk + j]
            steps, weights = [], []
            for idx, d in enumerate(dils):
                if rb_type == "1":
                    steps.append(_step(K=k_rb, d=d, act_in=True, carry_in=True))
                    weights.append((rb["c1"][idx]["w"], rb["c1"][idx]["b"]))
                    steps.append(_step(K=k_rb, d=1, act_in=True, add_carry=True))
                    weights.append((rb["c2"][idx]["w"], rb["c2"][idx]["b"]))
                else:   # ResBlock2: one conv per dilation with residual
                    steps.append(_step(K=k_rb, d=d, act_in=True,
                                       carry_in=True, add_carry=True))
                    weights.append((rb["c1"][idx]["w"], rb["c1"][idx]["b"]))
            # whole resblock fused; previous resblocks' sum fused via `acc`
            acc = pallas_conv_chain(x, steps, weights, t_valid=t_valid,
                                    c_out=C, acc=acc)
        x = acc
        scale = 1.0 / nk    # mean over resblock kernels folded into next conv

    cpo = pp["conv_post"]
    y = pallas_conv_chain(
        x, [_step(K=cpo["K"], act_in=True, slope=0.01, in_scale=scale)],
        [(cpo["w"], cpo["b"])], t_valid=t_valid, c_out=cpo["C_out"],
        out_dtype=jnp.float32, final_tanh=True)
    return y[:, :1, :t_valid]    # drop padded rows / lanes


# ----------------------------------------------------------------------------
# Pure-JAX (lax) reference, independent of the Pallas/polyphase rewrites.
# act_dtype (optional) emulates the kernel's bf16 inter-layer storage.
# ----------------------------------------------------------------------------
def ref_generator_forward(params, cfg, x, g=None, compute_dtype=jnp.float32,
                          act_dtype=None):
    nk = len(cfg["resblock_kernel_sizes"])

    def cast_act(v):
        return v if act_dtype is None else v.astype(act_dtype).astype(jnp.float32)

    def leaky(v, s):
        return jnp.where(v >= 0, v, s * v)

    def conv(xx, w, b, dilation, pad, act_in=False, slope=LRELU_SLOPE,
             act_out=None):
        if act_in:
            xx = leaky(xx, slope)
        y = lax.conv_general_dilated(
            xx.astype(compute_dtype), w.astype(compute_dtype),
            window_strides=(1,), padding=[(pad, pad)],
            rhs_dilation=(dilation,), dimension_numbers=("NCH", "OIH", "NCH"),
            preferred_element_type=jnp.float32)
        if b is not None:
            y = y + b[None, :, None].astype(jnp.float32)
        if act_out == "tanh":
            y = jnp.tanh(y)
        return y

    def conv_t(xx, w_ct, b, u, k):
        p = (k - u) // 2
        w_eq = jnp.transpose(w_ct, (1, 0, 2))[:, :, ::-1]
        y = lax.conv_general_dilated(
            xx.astype(compute_dtype), w_eq.astype(compute_dtype),
            window_strides=(1,), padding=[(k - 1 - p, k - 1 - p)],
            lhs_dilation=(u,), dimension_numbers=("NCH", "OIH", "NCH"),
            preferred_element_type=jnp.float32)
        return y + b[None, :, None].astype(jnp.float32)

    x = conv(x, params["conv_pre"]["w"], params["conv_pre"]["b"], 1, 3)
    if g is not None:
        x = x + conv(g, params["cond"]["w"], params["cond"]["b"], 1, 0)
    x = cast_act(x)
    for i, (u, k_up) in enumerate(zip(cfg["upsample_rates"],
                                      cfg["upsample_kernel_sizes"])):
        x = leaky(x, LRELU_SLOPE)
        x = cast_act(conv_t(x, params["ups"][i]["w"], params["ups"][i]["b"],
                            u, k_up))
        acc = None
        for j, (k_rb, dils) in enumerate(zip(cfg["resblock_kernel_sizes"],
                                             cfg["resblock_dilation_sizes"])):
            rb = params["resblocks"][i * nk + j]
            xr = x
            for idx, d in enumerate(dils):
                if cfg.get("resblock", "1") == "1":
                    xt = conv(xr, rb["w1"][idx], rb["b1"][idx], d,
                              d * (k_rb - 1) // 2, act_in=True)
                    xr = conv(xt, rb["w2"][idx], rb["b2"][idx], 1,
                              (k_rb - 1) // 2, act_in=True) + xr
                else:
                    xr = conv(xr, rb["w1"][idx], rb["b1"][idx], d,
                              d * (k_rb - 1) // 2, act_in=True) + xr
            acc = xr if acc is None else acc + xr
            acc = cast_act(acc)
        x = acc / nk
    x = conv(x, params["conv_post"]["w"], None, 1, 3, act_in=True, slope=0.01,
             act_out="tanh")
    return x


# ----------------------------------------------------------------------------
# Deterministic synthetic parameter init (shapes follow the PyTorch __init__).
# ----------------------------------------------------------------------------
def init_params(key, cfg):
    keys = iter(jax.random.split(key, 512))

    def norm(shape, scale):
        return scale * jax.random.normal(next(keys), shape, jnp.float32)

    c0 = cfg["initial_channel"]
    uc = cfg["upsample_initial_channel"]
    params = {"conv_pre": {"w": norm((uc, c0, 7), 0.1), "b": norm((uc,), 0.1)}}
    if cfg.get("gin_channels", 0):
        params["cond"] = {"w": norm((uc, cfg["gin_channels"], 1), 0.1),
                          "b": norm((uc,), 0.1)}
    params["ups"] = []
    ch = uc
    for i, (u, k) in enumerate(zip(cfg["upsample_rates"],
                                   cfg["upsample_kernel_sizes"])):
        cin = uc // (2 ** i)
        cout = uc // (2 ** (i + 1))
        params["ups"].append({"w": norm((cin, cout, k), 0.01),
                              "b": norm((cout,), 0.01)})
        ch = cout
    params["resblocks"] = []
    for i in range(len(cfg["upsample_rates"])):
        c = uc // (2 ** (i + 1))
        for k, dils in zip(cfg["resblock_kernel_sizes"],
                           cfg["resblock_dilation_sizes"]):
            rb = {"w1": [], "b1": [], "w2": [], "b2": []}
            for _d in dils:
                rb["w1"].append(norm((c, c, k), 0.1))
                rb["b1"].append(norm((c,), 0.1))
                rb["w2"].append(norm((c, c, k), 0.1))
                rb["b2"].append(norm((c,), 0.1))
            params["resblocks"].append(rb)
    params["conv_post"] = {"w": norm((1, ch, 7), 0.1)}   # bias=False
    return params


if __name__ == "__main__":
    cfg = dict(
        initial_channel=8,
        resblock="1",
        resblock_kernel_sizes=[3, 5],
        resblock_dilation_sizes=[[1, 3, 5], [1, 3, 5]],
        upsample_rates=[2, 2],
        upsample_initial_channel=32,
        upsample_kernel_sizes=[4, 4],
        gin_channels=0,   # cond branch not exercised (matches default g=None)
    )
    key = jax.random.PRNGKey(0)
    kp, kx = jax.random.split(key)
    params = init_params(kp, cfg)

    # T = 200 -> 400 -> 800: exercises ragged valid lengths (T not a multiple
    # of 128), multi-tile grids with cross-tile halo fetches, clamped boundary
    # blocks with in-kernel masking, and 128/256/512-lane tiles.
    x = jax.random.normal(kx, (2, cfg["initial_channel"], 200), jnp.float32)

    pp = prepare_pallas_params(params, cfg)
    out = jax.block_until_ready(pallas_generator_forward(pp, cfg, x))
    assert out.shape == (2, 1, 200 * 2 * 2), out.shape

    # Check 1: matched precision (bf16 matmuls + bf16 inter-layer storage),
    # independent lax conv / conv-transpose (lhs_dilation) reference ->
    # validates the fused Pallas chains AND the polyphase rewrite.
    ref_bf16 = jax.block_until_ready(
        ref_generator_forward(params, cfg, x, compute_dtype=COMPUTE_DTYPE,
                              act_dtype=ACT_DTYPE))
    err_bf16 = float(jnp.max(jnp.abs(out - ref_bf16)))
    assert err_bf16 < 3e-2, f"Pallas vs matched bf16 reference: {err_bf16}"

    # Check 2: full f32 semantics of the original module (loose sanity bound on
    # the bf16 compute/storage approximation; output is tanh-bounded).
    ref_f32 = jax.block_until_ready(
        ref_generator_forward(params, cfg, x, compute_dtype=jnp.float32))
    err_f32 = float(jnp.max(jnp.abs(out - ref_f32)))
    assert err_f32 < 2e-1, f"Pallas vs f32 reference: {err_f32}"

    print("KERNEL_OK")
</pallas_src>

<mosaic_0001>
module attributes {stable_mosaic.version = 11 : i64} {
  func.func @kernel(%arg0: i32, %arg1: i32, %arg2: memref<1x8x128xf32, #tpu.memory_space<vmem>>, %arg3: memref<1x8x256xf32, #tpu.memory_space<vmem>>, %arg4: memref<1x8x128xf32, #tpu.memory_space<vmem>>, %arg5: memref<32x56xbf16, #tpu.memory_space<vmem>>, %arg6: memref<32x1xf32, #tpu.memory_space<vmem>>, %arg7: memref<1x32x256xbf16, #tpu.memory_space<vmem>>) attributes {dimension_semantics = [#tpu.dimension_semantics<parallel>, #tpu.dimension_semantics<parallel>], iteration_bounds = array<i64: 2, 1>, scalar_prefetch = 0 : i64, scratch_operands = 0 : i64, tpu.core_type = #tpu.core_type<tc>, window_params = [{transform_indices = @transform_0, window_bounds = array<i64: 1, 8, 128>}, {transform_indices = @transform_1, window_bounds = array<i64: 1, 8, 256>}, {transform_indices = @transform_2, window_bounds = array<i64: 1, 8, 128>}, {pipeline_mode = #tpu.pipeline_mode<synchronous>, transform_indices = @transform_3, window_bounds = array<i64: 32, 56>}, {pipeline_mode = #tpu.pipeline_mode<synchronous>, transform_indices = @transform_4, window_bounds = array<i64: 32, 1>}, {transform_indices = @transform_5, window_bounds = array<i64: 1, 32, 256>}]} {
    %c0 = arith.constant 0 : index
    %c0_0 = arith.constant 0 : index
    %c0_1 = arith.constant 0 : index
    %0 = vector.load %arg2[%c0, %c0_0, %c0_1] : memref<1x8x128xf32, #tpu.memory_space<vmem>>, vector<1x8x128xf32>
    %1 = vector.shape_cast %0 : vector<1x8x128xf32> to vector<8x128xf32>
    %c0_2 = arith.constant 0 : index
    %c0_3 = arith.constant 0 : index
    %c0_4 = arith.constant 0 : index
    %2 = vector.load %arg3[%c0_2, %c0_3, %c0_4] : memref<1x8x256xf32, #tpu.memory_space<vmem>>, vector<1x8x256xf32>
    %3 = vector.shape_cast %2 : vector<1x8x256xf32> to vector<8x256xf32>
    %c0_5 = arith.constant 0 : index
    %c0_6 = arith.constant 0 : index
    %c0_7 = arith.constant 0 : index
    %4 = vector.load %arg4[%c0_5, %c0_6, %c0_7] : memref<1x8x128xf32, #tpu.memory_space<vmem>>, vector<1x8x128xf32>
    %5 = vector.shape_cast %4 : vector<1x8x128xf32> to vector<8x128xf32>
    %c256_i32 = arith.constant 256 : i32
    %6 = arith.muli %arg1, %c256_i32 : i32
    %7 = vector.extract_strided_slice %1 {offsets = [0, 125], sizes = [8, 3], strides = [1, 1]} : vector<8x128xf32> to vector<8x3xf32>
    %8 = vector.extract_strided_slice %5 {offsets = [0, 0], sizes = [8, 3], strides = [1, 1]} : vector<8x128xf32> to vector<8x3xf32>
    %9 = tpu.concatenate %7, %3, %8 in 1 : vector<8x3xf32>, vector<8x256xf32>, vector<8x3xf32> -> vector<8x262xf32>
    %c-3_i32 = arith.constant -3 : i32
    %10 = arith.addi %6, %c-3_i32 : i32
    %11 = tpu.iota {dimensions = array<i32: 1>} : vector<1x262xi32>
    %12 = vector.broadcast %10 : i32 to vector<1x262xi32>
    %13 = arith.addi %12, %11 : vector<1x262xi32>
    %c0_i32 = arith.constant 0 : i32
    %14 = vector.broadcast %c0_i32 : i32 to vector<1x262xi32>
    %15 = arith.cmpi sge, %13, %14 : vector<1x262xi32>
    %c200_i32 = arith.constant 200 : i32
    %16 = vector.broadcast %c200_i32 : i32 to vector<1x262xi32>
    %17 = arith.cmpi slt, %13, %16 : vector<1x262xi32>
    %18 = arith.andi %15, %17 : vector<1x262xi1>
    %19 = arith.extui %18 : vector<1x262xi1> to vector<1x262xi32>
    %20 = arith.sitofp %19 : vector<1x262xi32> to vector<1x262xf32>
    %21 = vector.broadcast %20 : vector<1x262xf32> to vector<8x262xf32>
    %22 = arith.mulf %9, %21 : vector<8x262xf32>
    %23 = arith.truncf %22 : vector<8x262xf32> to vector<8x262xbf16>
    %24 = vector.extract_strided_slice %23 {offsets = [0, 0], sizes = [8, 256], strides = [1, 1]} : vector<8x262xbf16> to vector<8x256xbf16>
    %25 = vector.extract_strided_slice %23 {offsets = [0, 1], sizes = [8, 256], strides = [1, 1]} : vector<8x262xbf16> to vector<8x256xbf16>
    %26 = vector.extract_strided_slice %23 {offsets = [0, 2], sizes = [8, 256], strides = [1, 1]} : vector<8x262xbf16> to vector<8x256xbf16>
    %27 = vector.extract_strided_slice %23 {offsets = [0, 3], sizes = [8, 256], strides = [1, 1]} : vector<8x262xbf16> to vector<8x256xbf16>
    %28 = vector.extract_strided_slice %23 {offsets = [0, 4], sizes = [8, 256], strides = [1, 1]} : vector<8x262xbf16> to vector<8x256xbf16>
    %29 = vector.extract_strided_slice %23 {offsets = [0, 5], sizes = [8, 256], strides = [1, 1]} : vector<8x262xbf16> to vector<8x256xbf16>
    %30 = vector.extract_strided_slice %23 {offsets = [0, 6], sizes = [8, 256], strides = [1, 1]} : vector<8x262xbf16> to vector<8x256xbf16>
    %31 = tpu.concatenate %24, %25, %26, %27, %28, %29, %30 in 0 : vector<8x256xbf16>, vector<8x256xbf16>, vector<8x256xbf16>, vector<8x256xbf16>, vector<8x256xbf16>, vector<8x256xbf16>, vector<8x256xbf16> -> vector<56x256xbf16>
    %c0_8 = arith.constant 0 : index
    %c0_9 = arith.constant 0 : index
    %32 = vector.load %arg5[%c0_8, %c0_9] : memref<32x56xbf16, #tpu.memory_space<vmem>>, vector<32x56xbf16>
    %cst = arith.constant dense<0.000000e+00> : vector<32x256xf32>
    %33 = tpu.matmul %32, %31, %cst {dimension_numbers = #tpu.dot_dimension_numbers<[1], [0], [0], [1], [0, 0, 1, 1], [], []>} : vector<32x56xbf16>, vector<56x256xbf16>, vector<32x256xf32> -> vector<32x256xf32>
    %c0_10 = arith.constant 0 : index
    %c0_11 = arith.constant 0 : index
    %34 = vector.load %arg6[%c0_10, %c0_11] : memref<32x1xf32, #tpu.memory_space<vmem>>, vector<32x1xf32>
    %35 = vector.broadcast %34 : vector<32x1xf32> to vector<32x256xf32>
    %36 = arith.addf %33, %35 : vector<32x256xf32>
    %c0_i32_12 = arith.constant 0 : i32
    %37 = arith.addi %6, %c0_i32_12 : i32
    %38 = tpu.iota {dimensions = array<i32: 1>} : vector<1x256xi32>
    %39 = vector.broadcast %37 : i32 to vector<1x256xi32>
    %40 = arith.addi %39, %38 : vector<1x256xi32>
    %c0_i32_13 = arith.constant 0 : i32
    %41 = vector.broadcast %c0_i32_13 : i32 to vector<1x256xi32>
    %42 = arith.cmpi sge, %40, %41 : vector<1x256xi32>
    %c200_i32_14 = arith.constant 200 : i32
    %43 = vector.broadcast %c200_i32_14 : i32 to vector<1x256xi32>
    %44 = arith.cmpi slt, %40, %43 : vector<1x256xi32>
    %45 = arith.andi %42, %44 : vector<1x256xi1>
    %46 = arith.extui %45 : vector<1x256xi1> to vector<1x256xi32>
    %47 = arith.sitofp %46 : vector<1x256xi32> to vector<1x256xf32>
    %48 = vector.broadcast %47 : vector<1x256xf32> to vector<32x256xf32>
    %49 = arith.mulf %36, %48 : vector<32x256xf32>
    %50 = arith.truncf %49 : vector<32x256xf32> to vector<32x256xbf16>
    %c0_15 = arith.constant 0 : index
    %c0_16 = arith.constant 0 : index
    %c0_17 = arith.constant 0 : index
    %51 = vector.load %arg7[%c0_15, %c0_16, %c0_17] : memref<1x32x256xbf16, #tpu.memory_space<vmem>>, vector<1x32x256xbf16>
    %52 = vector.shape_cast %51 : vector<1x32x256xbf16> to vector<32x256xbf16>
    %53 = vector.shape_cast %50 : vector<32x256xbf16> to vector<1x32x256xbf16>
    tpu.vector_store %arg7[%c0_15, %c0_16, %c0_17], %53 {strides = array<i32>} : memref<1x32x256xbf16, #tpu.memory_space<vmem>>, vector<1x32x256xbf16>,
    return
  }
  func.func @transform_0(%arg0: i32, %arg1: i32) -> (i32, i32, i32) {
    %c2_i32 = arith.constant 2 : i32
    %0 = arith.muli %arg1, %c2_i32 : i32
    %c1_i32 = arith.constant 1 : i32
    %1 = arith.subi %0, %c1_i32 : i32
    %c0_i32 = arith.constant 0 : i32
    %2 = arith.maxsi %1, %c0_i32 : i32
    %c0_i32_0 = arith.constant 0 : i32
    %c0_i32_1 = arith.constant 0 : i32
    return %arg0, %c0_i32_0, %2 : i32, i32, i32
  }
  func.func @transform_1(%arg0: i32, %arg1: i32) -> (i32, i32, i32) {
    %c0_i32 = arith.constant 0 : i32
    %c0_i32_0 = arith.constant 0 : i32
    return %arg0, %c0_i32, %arg1 : i32, i32, i32
  }
  func.func @transform_2(%arg0: i32, %arg1: i32) -> (i32, i32, i32) {
    %c1_i32 = arith.constant 1 : i32
    %0 = arith.addi %arg1, %c1_i32 : i32
    %c2_i32 = arith.constant 2 : i32
    %1 = arith.muli %0, %c2_i32 : i32
    %c1_i32_0 = arith.constant 1 : i32
    %2 = arith.minsi %1, %c1_i32_0 : i32
    %c0_i32 = arith.constant 0 : i32
    %c0_i32_1 = arith.constant 0 : i32
    return %arg0, %c0_i32, %2 : i32, i32, i32
  }
  func.func @transform_3(%arg0: i32, %arg1: i32) -> (i32, i32) {
    %c0_i32 = arith.constant 0 : i32
    %c0_i32_0 = arith.constant 0 : i32
    %c0_i32_1 = arith.constant 0 : i32
    return %c0_i32, %c0_i32_0 : i32, i32
  }
  func.func @transform_4(%arg0: i32, %arg1: i32) -> (i32, i32) {
    %c0_i32 = arith.constant 0 : i32
    %c0_i32_0 = arith.constant 0 : i32
    %c0_i32_1 = arith.constant 0 : i32
    return %c0_i32, %c0_i32_0 : i32, i32
  }
  func.func @transform_5(%arg0: i32, %arg1: i32) -> (i32, i32, i32) {
    %c0_i32 = arith.constant 0 : i32
    %c0_i32_0 = arith.constant 0 : i32
    return %arg0, %c0_i32, %arg1 : i32, i32, i32
  }
}

</mosaic_0001>

<bundles_post_ra>
// kernel: tpu_custom_call.1
= control target key start
LH: loop header
LB: loop body
LE: loop exit
PB: predicated region body
PF: predicated region fallthrough
CT: control target
= control target key end

     0   :  { %s1505_s0 = inlined_call_operand.vmem [shape: f32[2,8,256], index: 0, kind: input, shape index: {}]   ;;  %s1506_s1 = inlined_call_operand.hbm [shape: f32[2,8,256], index: 1, kind: input, shape index: {}]   ;;  %s1507_s2 = inlined_call_operand.hbm [shape: f32[2,8,256], index: 2, kind: input, shape index: {}]   ;;  %s1508_s3 = inlined_call_operand.hbm [shape: bf16[32,56], index: 3, kind: input, shape index: {}]   ;;  %s1509_s4 = inlined_call_operand.vmem [shape: f32[32,1], index: 4, kind: input, shape index: {}]   ;;  %s1510_s5 = inlined_call_operand.hbm [shape: bf16[2,32,256], index: 5, kind: output, shape index: {}]  }
   0x1   :  { %1516 = sst [smem:[#allocation14_spill]] %s1506_s1 }
   0x2   :  { %1517 = sst [smem:[#allocation15_spill]] %s1508_s3 }
   0x3   :  { %10 = vsyncpa [#allocation3], 0 }
   0x4   :  { %12 = vsyncpa [#allocation3 + $0x1], 0 }
   0x5   :  { %13 = vsyncpa [#allocation6], 0 }
   0x6   :  { %15 = vsyncpa [#allocation6 + $0x1], 0 }
   0x7   :  { %16 = vsyncpa [#allocation4], 0 }
   0x8   :  { %18 = vsyncpa [#allocation4 + $0x1], 0  ;;  %s1216_s18 = smov 0   ;;  %s1218_s19 = smov 0  }
   0x9   :  { %s1220_s20 = smov 0   ;;  %s1222_s21 = smov 0  }
   0xa   :  { %s1224_s22 = smov 0   ;;  %s1226_s23 = smov 0  }
   0xb LB: > { %s1247_s24 = sadd.s32 4294967295, %s1167_s23   ;;  %s842_s25 = sadd.s32 4294967294, %s1167_s23   ;;  %s1167_s23 = sphi %s1226_s23, %s24_s23   ;;  %s1163_s22 = sphi %s1224_s22, %s1541_s22   ;;  %s1159_s21 = sphi %s1222_s21, %s1540_s21   ;;  %s1155_s20 = sphi %s1220_s20, %s1539_s20   ;;  %s1151_s19 = sphi %s1218_s19, %s1538_s19   ;;  %s1147_s18 = sphi %s1216_s18, %s1537_s18  }
   0xc   : > { %p94_p0 = scmp.ne.s32.totalorder %s1151_s19, %s1147_s18  ;;  %p1511_p1 = scmp.eq.s32.totalorder %s1247_s24, 0 }
   0xd   : > { %p204_p3 = scmp.eq.s32.totalorder %s842_s25, 1  ;;  %p843_p5 = scmp.ge.s32.totalorder %s1167_s23, 1 }
   0xe   : > { %p1256_p4 = por %p1511_p1, %p94_p0  ;;  %p211_p7 = scmp.lt.s32.totalorder %s1167_s23, 3 }
   0xf   : > { %p1261_p6 = por %p204_p3, %p94_p0  ;;  %s1169_s29 = smov [#allocation7]  }
  0x10   : > { %s1518_s26 = scalar_select %p1256_p4, 1, 0 }
  0x11   : > { %s1519_s27 = scalar_select %p1261_p6, 1, 0 }
  0x12   : > { %p1266_p8 = pnand %p843_p5, %p211_p7  ;;  %s223_s30 = sshll.u32 %s1169_s29, 4  ;;  %s224_s30 = int_to_ptr.vmem [resolvable:$true] %s223_s30 }
  0x13   : > { %s36_s7 = sadd.s32 1, %s1163_s22  ;;  %s1522_s3 = sld [smem:[#allocation15_spill]] }
  0x14   : > { %s1520_s28 = scalar_select %p1266_p8, 1, 0 }
  0x15   : > { %p904_p9 = pneg %p1266_p8 }
  0x17   : > { %p1275_p11 = pnand %p904_p9, %p1511_p1 }
  0x19   : > { %s989_s10 = scalar_lea.hbm %s1522_s3, 256  ;;  %p991_p13 = pneg %p1275_p11 }
  0x1a   : > { %p990_p12 = scmp.ne.s32.totalorder %s1522_s3, %s989_s10  ;;  %p996_p5 = scmp.lt.u32.totalorder %s989_s10, %s1522_s3 }
  0x1c   : > { %p992_p0 = pnand %p991_p13, %p990_p12 }
  0x1e   : > { %p993_p3 = pneg %p992_p0 }
  0x20   : > { %p998_p7 = pnand %p996_p5, %p993_p3 }
  0x22   : > { %1001 = shalt.err (!%p998_p7)
}
  0x23   : > { %s1002_s15 = scalar_lea.vmem %s224_s30, 256  ;;  %p1010_p2 = scmp.lt.s32.totalorder %s224_s30, %s224_s30 }
  0x24   : > { %p1003_p9 = scmp.ne.s32.totalorder %s224_s30, %s1002_s15  ;;  %p1011_p6 = scmp.lt.s32.totalorder %s1002_s15, %s1002_s15 }
  0x26   : > { %p1005_p10 = pnand %p1003_p9, %p991_p13  ;;  %p1012_p4 = por %p1011_p6, %p1010_p2 }
  0x28   : > { %p1006_p1 = pneg %p1005_p10 }
  0x2a   : > { %p1013_p8 = pnand %p1012_p4, %p1006_p1 }
  0x2c   : > { %1016 = shalt.err (!%p1013_p8)
}
  0x2d   : > { %s1170_s16 = smov 64   ;;  %s1171_s17 = smov 4  }
  0x2e   : > { %907 = dma.hbm_to_vmem [thread:$0]  (!%p1275_p11), %s1522_s3, 256, %s224_s30, [#allocation6], %s1170_s16, %s1170_s16, %s1171_s17  }
  0x2f   : > { %p38_p1 = scmp.ge.s32.totalorder %s36_s7, 2  ;;  %s81_s8 = sadd.s32 1, %s1155_s20 }
  0x30   : > { %p88_p2 = scmp.ne.s32.totalorder %s1155_s20, %s1151_s19  ;;  %p89_p4 = scmp.eq.s32.totalorder %s1167_s23, 0 }
  0x31   : > { %s1543_s7 = smov (%p38_p1, %s36_s7), 0  ;;  %p1525_p8 = scmp.eq.s32.totalorder %s1247_s24, 1 }
  0x32   : > { %1523 = sst [smem:[#allocation13_spill]] %s1543_s7  ;;  %p1302_p6 = por %p89_p4, %p88_p2 }
  0x33   : > { %p1308_p10 = por %p1525_p8, %p88_p2  ;;  %s76_s10 = ssub.s32 %s1163_s22, %s1543_s7 }
  0x34   : > { %p920_p11 = scmp.lt.s32.totalorder %s1167_s23, 2  ;;  %p79_p12 = scmp.eq.s32.totalorder %s76_s10, 0 }
  0x35   : > { %s1526_s6 = scalar_select %p1308_p10, 1, 0 }
  0x36   : > { %s1316_s30 = sand.u32 1, %s1155_s20   ;;  %s876_s13 = sshll.u32 %s1163_s22, 8 }
  0x37   : > { %s846_s11 = sshll.u32 %s1316_s30, 4  ;;  %s1527_s1 = sld [smem:[#allocation14_spill]] }
  0x38   : > { %s1320_s12 = scalar_select %p79_p12, %s1155_s20, %s81_s8  }
  0x39   : > { %s263_s17 = scalar_lea.vmem [#allocation2], %s846_s11  ;;  %p1332_p13 = pnand %p920_p11, %p1302_p6 }
  0x3a   : > { %s273_s25 = sshll.u32 %s263_s17, 4  ;;  %s280_s8 = sand.u32 1, %s1167_s23   ;;  %s1328_s25 = int_to_ptr.vmem [resolvable:$true] %s273_s25 }
  0x3b   : > { %s1337_s10 = sadd.s32 128, %s876_s13  ;;  %s260_s14 = scalar_lea.sflag [#allocation3], %s1316_s30 }
  0x3c   : > { %p1019_p3 = pneg %p1332_p13 }
  0x3d   : > { %s1326_s16 = scalar_lea.hbm %s1527_s1, %s876_s13  ;;  %s1022_s17 = scalar_lea.hbm %s1527_s1, 512 }
  0x3e   : > { %s1017_s15 = scalar_lea.hbm %s1326_s16, 256  ;;  %p1023_p9 = scmp.lt.u32.totalorder %s1326_s16, %s1527_s1 }
  0x3f   : > { %p1018_p0 = scmp.ne.s32.totalorder %s1326_s16, %s1017_s15  ;;  %p1024_p1 = scmp.lt.u32.totalorder %s1022_s17, %s1017_s15 }
  0x40   : > { %p1026_p4 = scmp.lt.u32.totalorder %s1017_s15, %s1326_s16 }
  0x41   : > { %p1020_p5 = pnand %p1019_p3, %p1018_p0  ;;  %p1025_p2 = por %p1024_p1, %p1023_p9 }
  0x43   : > { %p1021_p7 = pneg %p1020_p5  ;;  %p1027_p6 = por %p1026_p4, %p1025_p2 }
  0x45   : > { %p1028_p8 = pnand %p1027_p6, %p1021_p7 }
  0x47   : > { %1031 = shalt.err (!%p1028_p8)
}
  0x48   : > { %s1032_s13 = scalar_lea.vmem %s1328_s25, 256  ;;  %s1172_s11 = smov [#allocation2]  }
  0x49   : > { %p1033_p11 = scmp.ne.s32.totalorder %s1328_s25, %s1032_s13  ;;  %s1037_s9 = sshll.u32 %s1172_s11, 4  ;;  %s1038_s9 = int_to_ptr.vmem [resolvable:$false] %s1037_s9 }
  0x4a   : > { %s1039_s3 = scalar_lea.vmem %s1038_s9, 512  ;;  %p1040_p5 = scmp.lt.s32.totalorder %s1328_s25, %s1038_s9 }
  0x4b   : > { %p1035_p12 = pnand %p1033_p11, %p1019_p3  ;;  %p1041_p9 = scmp.lt.s32.totalorder %s1039_s3, %s1032_s13 }
  0x4d   : > { %p1036_p0 = pneg %p1035_p12  ;;  %p1042_p1 = por %p1041_p9, %p1040_p5 }
  0x4f   : > { %p1043_p2 = pnand %p1042_p1, %p1036_p0 }
  0x51   : > { %1046 = shalt.err (!%p1043_p2)
}
  0x52   : > { %911 = dma.hbm_to_vmem [thread:$0]  (!%p1332_p13), %s1326_s16, 256, %s1328_s25, %s260_s14  }
  0x53   : > { %s849_s7 = sshll.u32 %s1316_s30, 3  ;;  %s1370_s11 = scalar_lea.hbm %s1507_s2, %s1337_s10 }
  0x54   : > { %s284_s13 = scalar_lea.vmem [#allocation5], %s849_s7  ;;  %s281_s3 = scalar_lea.sflag [#allocation6], %s280_s8 }
  0x55   : > { %s297_s9 = sshll.u32 %s284_s13, 4  ;;  %s1047_s1 = scalar_lea.hbm %s1370_s11, 128  ;;  %s298_s9 = int_to_ptr.vmem [resolvable:$true] %s297_s9 }
  0x56   : > { %p1048_p7 = scmp.ne.s32.totalorder %s1370_s11, %s1047_s1  ;;  %s1052_s25 = scalar_lea.hbm %s1507_s2, 512 }
  0x57   : > { %p1053_p8 = scmp.lt.u32.totalorder %s1370_s11, %s1507_s2  ;;  %p1054_p11 = scmp.lt.u32.totalorder %s1052_s25, %s1047_s1 }
  0x58   : > { %p1050_p4 = pnand %p1048_p7, %p1019_p3  ;;  %p1056_p0 = scmp.lt.u32.totalorder %s1047_s1, %s1370_s11 }
  0x59   : > { %p1055_p12 = por %p1054_p11, %p1053_p8 }
  0x5a   : > { %p1051_p6 = pneg %p1050_p4 }
  0x5b   : > { %p1057_p5 = por %p1056_p0, %p1055_p12 }
  0x5d   : > { %p1058_p9 = pnand %p1057_p5, %p1051_p6 }
  0x5f   : > { %1061 = shalt.err (!%p1058_p9)
}
  0x60   : > { %s1062_s8 = scalar_lea.vmem %s298_s9, 128  ;;  %s1173_s7 = smov [#allocation5]  }
  0x61   : > { %p1063_p1 = scmp.ne.s32.totalorder %s298_s9, %s1062_s8  ;;  %s1067_s15 = sshll.u32 %s1173_s7, 4  ;;  %s1068_s15 = int_to_ptr.vmem [resolvable:$false] %s1067_s15 }
  0x62   : > { %s1069_s17 = scalar_lea.vmem %s1068_s15, 256  ;;  %p1070_p4 = scmp.lt.s32.totalorder %s298_s9, %s1068_s15 }
  0x63   : > { %p1065_p2 = pnand %p1063_p1, %p1019_p3  ;;  %p1071_p10 = scmp.lt.s32.totalorder %s1069_s17, %s1062_s8 }
  0x65   : > { %p1066_p7 = pneg %p1065_p2  ;;  %p1072_p8 = por %p1071_p10, %p1070_p4 }
  0x67   : > { %p1073_p11 = pnand %p1072_p8, %p1066_p7 }
  0x69   : > { %1076 = shalt.err (!%p1073_p11)
}
  0x6a   : > { %914 = dma.hbm_to_vmem [thread:$0]  (!%p1332_p13), %s1370_s11, 128, %s298_s9, %s281_s3  }
  0x6b   : > { %p1529_p6 = scmp.ne.s32.totalorder %s1520_s28, 0 }
  0x6c   : > { %s1396_s1 = sand.u32 (!%p1529_p6), 1, %s1151_s19   ;;  %p1530_p3 = scmp.ne.s32.totalorder (!%p1529_p6), %s1518_s26, 0 }
  0x6d   : > { %306 = sbr.rel (%p1529_p6) target bundleno = 637 (0x27d), region = 40  ;;  %s853_s13 = sshll.u32 (!%p1529_p6), %s1396_s1, 4 }
  0x6e   : > { %s309_s30 = scalar_lea.sflag (!%p1529_p6), [#allocation3], %s1396_s1  ;;  %s312_s16 = scalar_lea.vmem (!%p1529_p6), [#allocation2], %s853_s13 }
  0x74   : > { %1130 = dma.done.wait (%p1530_p3), %s309_s30, 256  }
  0x75   : > { %1132 = vsyncadd (%p1530_p3), %s309_s30, 4294967040  ;;  %s317_s29 = sand.u32 1, %s1247_s24   ;;  %s854_s28 = sshll.u32 %s1396_s1, 3 }
  0x76   : > { %s318_s11 = scalar_lea.sflag [#allocation6], %s317_s29  ;;  %s321_s9 = scalar_lea.vmem [#allocation5], %s854_s28 }
  0x77   : > { %1134 = dma.done.wait (%p1530_p3), %s318_s11, 128  }
  0x78   : > { %1136 = vsyncadd (%p1530_p3), %s318_s11, 4294967168  ;;  %p1531_p10 = scmp.eq.s32.totalorder %s1247_s24, 0 }
  0x7a   : > { %1138 = dma.done.wait (%p1531_p10), [#allocation6], 256   ;;  %p1532_p13 = pmov %p1531_p10 }
  0x7b   : > { %p373_p12 = scmp.lt.s32.totalorder %s1159_s21, 1  ;;  %v395_v0 = vld [vmem:[%s321_s9] sm:$0xff]  ;;  %s1174_s7 = smov 3   ;;  %v394_v2 = vld [vmem:[%s312_s16 + $0x8] sm:$0xff]  ;;  %v419_v4 = vlaneseq  ;;  %vm407_vm1 = vcmask 23552   ;;  %v1175_v11 = vmov 0.0  }
  0x7c   : > { %1140 = vsyncadd (%p1532_p13), [#allocation6], 4294967040  ;;  %v393_v1 = vld [vmem:[%s312_s16] sm:$0xff]  ;;  %413 = vrot.lane.b32.xlu1 %v395_v0, %s1174_s7  ;;  %s1176_s24 = smov 126   ;;  %s1177_s26 = smov 124   ;;  %v1180_v28 = vmov 0  }
  0x7d   : > { %s374_s3 = scalar_select %p373_p12, %s1159_s21, 1  ;;  %403 = vrot.lane.b32.xlu0 %v393_v1, %s1174_s7  ;;  %v420_v5 = vand.u32 127, %v419_v4  ;;  %616 = vmatprep.mubr.bf16.mxu0 %v1180_v28  ;;  %v538_v29 = vld [vmem:[%s1509_s4 + $0x8] sm:$0xff]  ;;  %v537_v30 = vld [vmem:[%s1509_s4] sm:$0xff]  ;;  %v539_v31 = vld [vmem:[%s1509_s4 + $0x10] sm:$0xff]  ;;  %vm460_vm3 = vcmask 1039360  }
  0x7e   : > { %s1178_s15 = smov 127   ;;  %s1179_s17 = smov 125   ;;  %626 = vmatprep.mubr.bf16.mxu1 %v1180_v28  ;;  %986 = vset.pattern.permute.xlu1 %v1180_v28  ;;  %v540_v32 = vld [vmem:[%s1509_s4 + $0x18] sm:$0xff]  ;;  %vm508_vm4 = vcmask 1043456   ;;  %vm469_vm5 = vcmask 1031168   ;;  %vm478_vm6 = vcmask 1022976  }
  0x7f   : > { %s879_s25 = sshll.u32 %s374_s3, 4  ;;  %v1419_v6 = vadd.s32 128, %v420_v5  ;;  %v424_v8 = vadd.s32 4294967293, %v420_v5  ;;  %985 = vset.pattern.permute.xlu0 %v1180_v28  ;;  %s1181_s13 = smov 123   ;;  %vm487_vm7 = vcmask 1014784   ;;  %vm496_vm8 = vcmask 1006592  }
  0x80   : > { %s380_s8 = scalar_lea.vmem %s1505_s0, %s879_s25  ;;  %s1182_s30 = smov 122   ;;  %vm505_vm9 = vcmask 998400   ;;  %vm571_vm10 = vcmask 457728  }
  0x81   : > { %v392_v3 = vld [vmem:[%s380_s8] sm:$0xff]  ;;  %405 = vrot.lane.b32.xlu0 %v394_v2, %s1174_s7  ;;  %v425_v7 = vadd.s32 4294967293, %v1419_v6  ;;  %vm427_vm2 = vcmp.ge.s32.totalorder %v424_v8, 0  ;;  %v988_v8 = vld [vmem:[#allocation7 + $0x8] sm:$0xff]   ;;  %s856_s14 = sshll.u32 %s1396_s1, 5  ;;  %vm643_vm11 = vcmp.lt.s32.totalorder %v1419_v6, 200 }
  0x82   : > { %398 = vrot.lane.b32.xlu1 %v392_v3, %s1174_s7  ;;  %v859_v17 = vsel %vm427_vm2, 1.0, %v1175_v11  ;;  %s368_s8 = scalar_lea.vmem [#allocation8], %s856_s14  ;;  %p1533_p5 = scmp.ne.s32.totalorder %s1526_s6, 0 }
  0x83   : > { %vm431_vm0 = vcmp.lt.s32.totalorder %v425_v7, 200  ;;  %v987_v7 = vld [vmem:[#allocation7] sm:$0xff]   ;;  %s702_s7 = sshll.u32 %s368_s8, 4  ;;  %s1451_s7 = int_to_ptr.vmem [resolvable:$true] %s702_s7 }
  0x84   : > { %v860_v12 = vsel %vm431_vm0, 1.0, %v1175_v11 }
  0xee   : > { %v414_v9 = vpop.permute.xlu1 %413 }
  0xef   : > { %v404_v10 = vpop.permute.xlu0 %403 }
  0xf3   : > { %v406_v13 = vpop.permute.xlu0 %405 }
  0xf4   : > { %v399_v14 = vpop.permute.xlu1 %398  ;;  %v408_v15 = vsel %vm407_vm1, %v404_v10, %v406_v13  ;;  %v417_v16 = vsel %vm407_vm1, %v406_v13, %v414_v9 }
  0xf5   : > { %v416_v18 = vsel %vm407_vm1, %v399_v14, %v404_v10  ;;  %v443_v19 = vmul.f32 %v860_v12, %v408_v15  ;;  %v444_v20 = vmul.f32 0.0, %v417_v16 }
  0xf6   : > { %v442_v23 = vmul.f32 %v859_v17, %v416_v18  ;;  %v866_v17 = vsel %vm643_vm11, 1.0, %v1175_v11 }
  0xf7   : > { %v446_v21 = vpack.c.bf16 %v443_v19, %v443_v19  ;;  %v447_v22 = vpack.c.bf16 %v444_v20, %v444_v20 }
  0xf8   : > { %v445_v24 = vpack.c.bf16 %v442_v23, %v442_v23 }
  0xf9   : > { %467 = vrot.lane.b32.xlu0 %v447_v22, %s1176_s24  ;;  %465 = vrot.lane.b32.xlu1 %v446_v21, %s1176_s24  ;;  %v452_v25 = vrot.slane %v446_v21, 4  ;;  %v453_v27 = vrot.slane %v447_v22, 4 }
  0xfa   : > { %v451_v26 = vrot.slane %v445_v24, 4 }
  0xfd   : > { %485 = vrot.lane.b32.xlu0 %v447_v22, %s1177_s26  ;;  %463 = vrot.lane.b32.xlu1 %v445_v24, %s1176_s24  ;;  %s884_s24 = sshll.u32 %s1159_s21, 9  ;;  %s687_s21 = scalar_lea.sflag [#allocation4], %s1396_s1 }
 0x101   : > { %456 = vrot.lane.b32.xlu0 %v452_v25, %s1178_s15  ;;  %483 = vrot.lane.b32.xlu1 %v446_v21, %s1177_s26 }
 0x105   : > { %481 = vrot.lane.b32.xlu1 %v445_v24, %s1177_s26  ;;  %454 = vrot.lane.b32.xlu0 %v451_v26, %s1178_s15 }
 0x109   : > { %458 = vrot.lane.b32.xlu1 %v453_v27, %s1178_s15  ;;  %476 = vrot.lane.b32.xlu0 %v453_v27, %s1179_s17 }
 0x10d   : > { %474 = vrot.lane.b32.xlu1 %v452_v25, %s1179_s17  ;;  %472 = vrot.lane.b32.xlu0 %v451_v26, %s1179_s17  ;;  %s1456_s17 = scalar_lea.hbm %s1510_s5, %s884_s24 }
 0x111   : > { %492 = vrot.lane.b32.xlu1 %v452_v25, %s1181_s13  ;;  %494 = vrot.lane.b32.xlu0 %v453_v27, %s1181_s13 }
 0x115   : > { %499 = vrot.lane.b32.xlu1 %v445_v24, %s1182_s30  ;;  %490 = vrot.lane.b32.xlu0 %v451_v26, %s1181_s13  ;;  %s1077_s13 = scalar_lea.vmem %s1451_s7, 512 }
 0x116   : > { %p1078_p0 = scmp.ne.s32.totalorder %s1451_s7, %s1077_s13 }
 0x118   : > { %p1079_p9 = pnand %p1078_p0, %p1533_p5 }
 0x119   : > { %503 = vrot.lane.b32.xlu1 %v447_v22, %s1182_s30  ;;  %501 = vrot.lane.b32.xlu0 %v446_v21, %s1182_s30  ;;  %s1183_s30 = smov [#allocation8]  }
 0x11a   : > { %p1080_p1 = pneg %p1079_p9  ;;  %s1081_s16 = sshll.u32 %s1183_s30, 4  ;;  %s1082_s16 = int_to_ptr.vmem [resolvable:$false] %s1081_s16 }
 0x11b   : > { %s1083_s29 = scalar_lea.vmem %s1082_s16, 1024  ;;  %p1084_p2 = scmp.lt.s32.totalorder %s1451_s7, %s1082_s16 }
 0x11c   : > { %p1085_p7 = scmp.lt.s32.totalorder %s1083_s29, %s1077_s13 }
 0x11d   : > { %548 = vperm.xlu1 %986, %v538_v29   ;;  %543 = vperm.xlu0 %985, %v537_v30  }
 0x11e   : > { %p1086_p4 = por %p1085_p7, %p1084_p2 }
 0x120   : > { %p1087_p8 = pnand %p1086_p4, %p1080_p1 }
 0x121   : > { %553 = vperm.xlu1 %986, %v539_v31   ;;  %558 = vperm.xlu0 %985, %v540_v32  }
 0x16b   : > { %v468_v33 = vpop.permute.xlu0 %467  ;;  %v466_v34 = vpop.permute.xlu1 %465 }
 0x16c   : > { %v471_v49 = vsel %vm469_vm5, %v466_v34, %v468_v33 }
 0x16f   : > { %v486_v35 = vpop.permute.xlu0 %485  ;;  %v464_v36 = vpop.permute.xlu1 %463 }
 0x170   : > { %v470_v50 = vsel %vm469_vm5, %v464_v36, %v466_v34 }
 0x173   : > { %v457_v37 = vpop.permute.xlu0 %456  ;;  %v484_v38 = vpop.permute.xlu1 %483 }
 0x174   : > { %v489_v57 = vsel %vm487_vm7, %v484_v38, %v486_v35 }
 0x177   : > { %v455_v39 = vpop.permute.xlu0 %454  ;;  %v482_v40 = vpop.permute.xlu1 %481 }
 0x178   : > { %v461_v41 = vsel %vm460_vm3, %v455_v39, %v457_v37  ;;  %v488_v62 = vsel %vm487_vm7, %v482_v40, %v484_v38 }
 0x179   : > { %v511_v46 = vsel %vm508_vm4, %v445_v24, %v461_v41 }
 0x17b   : > { %v477_v42 = vpop.permute.xlu0 %476  ;;  %v459_v43 = vpop.permute.xlu1 %458 }
 0x17c   : > { %v462_v44 = vsel %vm460_vm3, %v457_v37, %v459_v43 }
 0x17d   : > { %v515_v45 = vsel %vm508_vm4, %v446_v21, %v462_v44 }
 0x17e   : > { %584 = vmatprep.subr.bf16.mxu0 %v515_v45  ;;  %886 = vmatprep.subr.bf16.mxu1 %v515_v45 }
 0x17f   : > { %v473_v47 = vpop.permute.xlu0 %472  ;;  %585 = vmatpush1.bf16.msra.mxu0 %v511_v46  ;;  %890 = vmatpush1.bf16.msra.mxu1 %v511_v46  ;;  %v475_v48 = vpop.permute.xlu1 %474 }
 0x180   : > { %v479_v51 = vsel %vm478_vm6, %v473_v47, %v475_v48  ;;  %v480_v52 = vsel %vm478_vm6, %v475_v48, %v477_v42 }
 0x181   : > { %v523_v53 = vsel %vm508_vm4, %v471_v49, %v480_v52  ;;  %v519_v54 = vsel %vm508_vm4, %v470_v50, %v479_v51 }
 0x182   : > { %586 = vmatprep.subr.bf16.mxu0 %v523_v53  ;;  %887 = vmatprep.subr.bf16.mxu1 %v523_v53 }
 0x183   : > { %v495_v55 = vpop.permute.xlu0 %494  ;;  %587 = vmatpush1.bf16.msra.mxu0 %v519_v54  ;;  %891 = vmatpush1.bf16.msra.mxu1 %v519_v54  ;;  %v493_v56 = vpop.permute.xlu1 %492 }
 0x184   : > { %v498_v58 = vsel %vm496_vm8, %v493_v56, %v495_v55 }
 0x185   : > { %v531_v59 = vsel %vm508_vm4, %v489_v57, %v498_v58 }
 0x186   : > { %588 = vmatprep.subr.bf16.mxu0 %v531_v59  ;;  %888 = vmatprep.subr.bf16.mxu1 %v531_v59 }
 0x187   : > { %v491_v60 = vpop.permute.xlu0 %490  ;;  %v500_v61 = vpop.permute.xlu1 %499 }
 0x188   : > { %v497_v63 = vsel %vm496_vm8, %v491_v60, %v493_v56 }
 0x189   : > { %v527_v0 = vsel %vm508_vm4, %v488_v62, %v497_v63 }
 0x18a   : > { %589 = vmatpush1.bf16.msra.mxu0 %v527_v0  ;;  %892 = vmatpush1.bf16.msra.mxu1 %v527_v0 }
 0x18b   : > { %v502_v1 = vpop.permute.xlu0 %501  ;;  %v504_v2 = vpop.permute.xlu1 %503 }
 0x18c   : > { %v506_v3 = vsel %vm505_vm9, %v500_v61, %v502_v1  ;;  %v507_v4 = vsel %vm505_vm9, %v502_v1, %v504_v2 }
 0x18d   : > { %863 = vmatprep.subr.msk.bf16.mxu0 %vm508_vm4, %v507_v4  ;;  %889 = vmatprep.subr.msk.bf16.mxu1 %vm508_vm4, %v507_v4  ;;  %v579_v5 = vsel %vm508_vm4, %v506_v3, 0 }
 0x18e   : > { %591 = vmatpush1.bf16.msra.mxu0 %v579_v5  ;;  %893 = vmatpush1.bf16.msra.mxu1 %v579_v5 }
 0x191   : > { %864 = vmatmul.mubr.msk.bf16.vlgmr.msra.gmra.mrb[0].mxu0 %vm571_vm10, %v987_v7  ;;  %865 = vmatmul.mubr.msk.bf16.vlgmr.msra.gmra.mrb[0].mxu1 %vm571_vm10, %v988_v8 }
 0x19c   : > { %v544_v9 = vpop.permute.xlu0 %543  ;;  %v549_v10 = vpop.permute.xlu1 %548 }
 0x1a0   : > { %v559_v12 = vpop.permute.xlu0 %558  ;;  %v554_v13 = vpop.permute.xlu1 %553 }
 0x264   : > { %v618_v14 = vpop.f32.mrb[0].mxu0  ;;  %v628_v15 = vpop.f32.mrb[0].mxu1 }
 0x265   : > { %v620_v16 = vpop.f32.mrb[1].mxu0  ;;  %v630_v18 = vpop.f32.mrb[1].mxu1  ;;  %v619_v23 = vadd.f32 %v618_v14, %v544_v9  ;;  %v629_v24 = vadd.f32 %v628_v15, %v554_v13 }
 0x266   : > { %v621_v19 = vadd.f32 %v620_v16, %v544_v9  ;;  %v631_v20 = vadd.f32 %v630_v18, %v554_v13  ;;  %v622_v21 = vpop.f32.mrb[2].mxu0  ;;  %v632_v22 = vpop.f32.mrb[2].mxu1 }
 0x267   : > { %v624_v25 = vpop.f32.mrb[3].mxu0  ;;  %v634_v26 = vpop.f32.mrb[3].mxu1  ;;  %v623_v30 = vadd.f32 %v622_v21, %v549_v10  ;;  %v633_v11 = vadd.f32 %v632_v22, %v559_v12 }
 0x268   : > { %v651_v6 = vmul.f32 %v866_v17, %v621_v19  ;;  %v655_v27 = vmul.f32 %v866_v17, %v631_v20  ;;  %v625_v28 = vadd.f32 %v624_v25, %v549_v10  ;;  %v635_v29 = vadd.f32 %v634_v26, %v559_v12 }
 0x26a   : > { %v880_v31 = vpack.c.bf16 %v651_v6, %v619_v23  ;;  %v882_v32 = vpack.c.bf16 %v655_v27, %v629_v24  ;;  %v653_v33 = vmul.f32 %v866_v17, %v625_v28  ;;  %v657_v34 = vmul.f32 %v866_v17, %v635_v29 }
 0x26c   : > { %682 = vst [vmem:[%s368_s8] sm:$0xff] %v880_v31  ;;  %684 = vst [vmem:[%s368_s8 + $0x10] sm:$0xff] %v882_v32  ;;  %v881_v35 = vpack.c.bf16 %v653_v33, %v623_v30  ;;  %v883_v36 = vpack.c.bf16 %v657_v34, %v633_v11 }
 0x26e   : > { %683 = vst [vmem:[%s368_s8 + $0x8] sm:$0xff] %v881_v35  ;;  %685 = vst [vmem:[%s368_s8 + $0x18] sm:$0xff] %v883_v36 }
 0x26f   : > { %1090 = shalt.err (!%p1087_p8)
}
 0x270   : > { %s1091_s28 = scalar_lea.hbm %s1456_s17, 512  ;;  %s1095_s3 = scalar_lea.hbm %s1510_s5, 1024 }
 0x271   : > { %p1092_p11 = scmp.ne.s32.totalorder %s1456_s17, %s1091_s28  ;;  %p1096_p10 = scmp.lt.u32.totalorder %s1456_s17, %s1510_s5 }
 0x272   : > { %p1097_p13 = scmp.lt.u32.totalorder %s1095_s3, %s1091_s28  ;;  %p1099_p0 = scmp.lt.u32.totalorder %s1091_s28, %s1456_s17 }
 0x273   : > { %p1093_p6 = pnand %p1092_p11, %p1533_p5 }
 0x274   : > { %p1098_p12 = por %p1097_p13, %p1096_p10 }
 0x275   : > { %p1094_p3 = pneg %p1093_p6 }
 0x276   : > { %p1100_p9 = por %p1099_p0, %p1098_p12 }
 0x278   : > { %p1101_p1 = pnand %p1100_p9, %p1094_p3 }
 0x27a   : > { %1104 = shalt.err (!%p1101_p1)
}
 0x27b   : > { %s1184_s14 = smov 128   ;;  %s1185_s8 = smov 8  }
 0x27c   : > { %902 = dma.vmem_to_hbm [thread:$0]  (%p1533_p5), %s1451_s7, 512, %s1456_s17, %s687_s21, %s1184_s14, %s1184_s14, %s1185_s8  }
 0x27d PF: > { %s717_s24 = sand.u32 1, %s1147_s18   ;;  %p1534_p2 = scmp.ne.s32.totalorder %s1519_s27, 0 }
 0x27e   : > { %p1535_p7 = scmp.ge.s32.totalorder %s1167_s23, 2  ;;  %s718_s26 = scalar_lea.sflag [#allocation4], %s717_s24 }
 0x280   : > { %p916_p4 = pnand %p1535_p7, %p1534_p2 }
 0x282   : > { %1142 = dma.done.wait (!%p916_p4), %s718_s26, 512  }
 0x283   : > { %1144 = vsyncadd (!%p916_p4), %s718_s26, 4294966784  ;;  %s24_s23 = sadd.s32 1, %s1167_s23   ;;  %s1536_s6 = sld [smem:[#allocation13_spill]] }
 0x284   : > { %p21_p8 = scmp.ge.s32.totalorder %s24_s23, 4   ;;  %s1537_s18 = smov %s1151_s19 }
 0x285   : > { %s1538_s19 = smov %s1155_s20  ;;  %s1539_s20 = smov %s1320_s12 }
 0x286   : > { %s1540_s21 = smov %s1163_s22  ;;  %23 = sbr.rel (!%p21_p8) target bundleno = 11 (0xb), region = 105 }
 0x289   : > { %s1541_s22 = smov %s1536_s6 }
 0x28d   :  { %723 = vsyncpa [#allocation3], 1 }
 0x28e   :  { %725 = vsyncpa [#allocation3 + $0x1], 1 }
 0x28f   :  { %726 = vsyncpa [#allocation6], 1 }
 0x290   :  { %728 = vsyncpa [#allocation6 + $0x1], 1 }
 0x291   :  { %729 = vsyncpa [#allocation4], 1 }
 0x292   :  { %731 = vsyncpa [#allocation4 + $0x1], 1 }

</bundles_post_ra>
